<compile_context>
chip_gen: v7x
topology: tpu7x:2x2x1
jax: 0.10.0
libtpu: 0.0.40
codegen_flags: <defaults>
</compile_context>

<pallas_src>
import jax
import jax.numpy as jnp
from jax.experimental import pallas as pl
from jax.experimental.pallas import tpu as pltpu


_ACTIVATIONS = {
    "relu": lambda h: jnp.maximum(h, 0.0),
    "leaky_relu": lambda h: jnp.where(h >= 0.0, h, 0.01 * h),
    "sigmoid": jax.nn.sigmoid,
    "tanh": jnp.tanh,
    "selu": jax.nn.selu,
    "elu": jax.nn.elu,
}


def _round_up(n, m):
    return ((n + m - 1) // m) * m


def _cdiv(a, b):
    return -(-a // b)


# ----------------------------- Pallas kernel ---------------------------------
def _make_mlp_kernel(dims, activation, compute_dtype):
    """Fused MLP kernel.  dims = [in_features, n1, ..., nL, 1] (all linear layer sizes)."""
    act = _ACTIVATIONS[activation]
    n_lin = len(dims) - 1        # total linears, incl. the output layer (>= 2)

    def kernel(x_ref, w_ref, b_ref, o_ref):
        # x_ref : (batch_tile, in_features)  f32   -- batch-major straight from HBM
        # w_ref : (n_lin, max_out, max_in)   zero-padded, grid-invariant
        # b_ref : (n_lin, max_out, 1)        f32,  grid-invariant
        # o_ref : (1, batch_tile)            f32   -- lane-dense output tile
        x = x_ref[...]
        if compute_dtype is not None:
            x = x.astype(compute_dtype)

        # Layer 0: contract over in_features (NT matmul) -> batch ends up on the lane
        # axis of h without any host- or kernel-side transpose of x.
        w0 = w_ref[0, :dims[1], :dims[0]]
        h = jax.lax.dot_general(w0, x, (((1,), (1,)), ((), ())),
                                preferred_element_type=jnp.float32)
        h = act(h + b_ref[0, :dims[1], :])                    # (n1, Bt) f32

        # Hidden layers: Linear -> activation (-> dropout(p=0) == identity).
        for li in range(1, n_lin - 1):
            if compute_dtype is not None:
                h = h.astype(compute_dtype)
            w = w_ref[li, :dims[li + 1], :dims[li]]
            h = jnp.dot(w, h, preferred_element_type=jnp.float32)
            h = act(h + b_ref[li, :dims[li + 1], :])

        # Output layer + sigmoid (lane-dense (1, Bt) result).
        if compute_dtype is not None:
            h = h.astype(compute_dtype)
        lo = n_lin - 1
        wo = w_ref[lo, :dims[lo + 1], :dims[lo]]
        logits = jnp.dot(wo, h, preferred_element_type=jnp.float32)
        o_ref[...] = jax.nn.sigmoid(logits + b_ref[lo, :dims[lo + 1], :])

    return kernel


# --------------------------- host-side helpers --------------------------------
def _pack_params(params, w_dtype):
    """Pack all weights/biases into two zero-padded arrays (one DMA each, grid-invariant)."""
    weights, biases = params["weights"], params["biases"]
    dims = [weights[0].shape[1]] + [w.shape[0] for w in weights]
    n_lin = len(weights)
    max_in = max(dims[:-1])
    max_out = max(dims[1:])
    wpack = jnp.zeros((n_lin, max_out, max_in), w_dtype)
    bpack = jnp.zeros((n_lin, max_out, 1), jnp.float32)
    for i, (w, b) in enumerate(zip(weights, biases)):
        wpack = wpack.at[i, : w.shape[0], : w.shape[1]].set(w.astype(w_dtype))
        bpack = bpack.at[i, : b.shape[0], 0].set(b.astype(jnp.float32))
    return wpack, bpack, dims


def _choose_tiling(B, batch_tile):
    """Pick (tile, B_pad): tile a multiple of 128, >=2 (even) grid steps once B_pad >= 256
    so both v7x TensorCores get work, big tiles for large batches (grid-overhead amortized)."""
    batch_tile = max(128, (batch_tile // 128) * 128)
    b_pad0 = _round_up(B, 128)
    nsteps = max(1, _cdiv(b_pad0, batch_tile))
    if b_pad0 > 128:
        nsteps = max(nsteps, 2)
    if nsteps > 1 and nsteps % 2:
        nsteps += 1
    tile = _round_up(_cdiv(b_pad0, nsteps), 128)
    return tile, tile * nsteps


# ------------------------------ wrapper --------------------------------------
def tunable_ffnn_forward(x, params, *, activation="relu", batch_tile=2048,
                         compute_dtype=jnp.bfloat16, min_pallas_batch=128):
    """x: (batch, in_features) f32.  params: {"weights": [(out,in)...], "biases": [(out,)...]}
    in torch nn.Linear layout.  Returns (batch, 1) float32 = sigmoid(MLP(x))."""
    B, in_features = x.shape

    # Small batches: launch + padding dominate; a plain fused jnp expression wins.
    if B < min_pallas_batch:
        return reference_forward(x, params, activation=activation,
                                 compute_dtype=compute_dtype)

    w_dtype = jnp.float32 if compute_dtype is None else compute_dtype
    wpack, bpack, dims = _pack_params(params, w_dtype)
    assert dims[0] == in_features

    tile, B_pad = _choose_tiling(B, batch_tile)
    grid = (B_pad // tile,)

    # x goes in untouched (no transpose/cast HBM pass); only ragged batches are
    # zero-padded.  Padded lanes produce sigmoid(bias-only) junk that is sliced off.
    if B_pad != B:
        x = jnp.pad(x, ((0, B_pad - B), (0, 0)))

    out = pl.pallas_call(
        _make_mlp_kernel(dims, activation, compute_dtype),
        out_shape=jax.ShapeDtypeStruct((1, B_pad), jnp.float32),
        grid_spec=pltpu.PrefetchScalarGridSpec(
            num_scalar_prefetch=0,
            grid=grid,
            in_specs=[
                pl.BlockSpec((tile, in_features), lambda i: (i, 0)),
                # Grid-invariant packed weights/biases: constant index_map -> fetched
                # once and reused every step (double-buffer copy is a few KiB).
                pl.BlockSpec(wpack.shape, lambda i: (0, 0, 0)),
                pl.BlockSpec(bpack.shape, lambda i: (0, 0, 0)),
            ],
            out_specs=pl.BlockSpec((1, tile), lambda i: (0, i)),
        ),
        compiler_params=pltpu.CompilerParams(
            dimension_semantics=("parallel",)),      # batch axis shards across v7x TCs
    )(x, wpack, bpack)

    return out[:, :B].T                              # (B, 1) float32


# --------------------------- parameter init ----------------------------------
def init_params(key, in_features, num_neurons):
    """torch.nn.Linear-style init: W (out, in), b (out,), U[-1/sqrt(fan_in), +1/sqrt(fan_in)]."""
    dims = [in_features] + list(num_neurons) + [1]
    weights, biases = [], []
    for fi, fo in zip(dims[:-1], dims[1:]):
        key, kw, kb = jax.random.split(key, 3)
        bound = 1.0 / float(fi) ** 0.5
        weights.append(jax.random.uniform(kw, (fo, fi), jnp.float32, -bound, bound))
        biases.append(jax.random.uniform(kb, (fo,), jnp.float32, -bound, bound))
    return {"weights": weights, "biases": biases}


# ------------------------------ reference ------------------------------------
def reference_forward(x, params, *, activation="relu", compute_dtype=jnp.bfloat16):
    """Pure-JAX reference (also the small-batch fallback) mirroring kernel numerics."""
    act = _ACTIVATIONS[activation]
    weights, biases = params["weights"], params["biases"]
    cast = (lambda a: a.astype(compute_dtype)) if compute_dtype is not None else (lambda a: a)
    h = cast(x)
    for w, b in zip(weights[:-1], biases[:-1]):
        h = jnp.dot(h, cast(w).T, preferred_element_type=jnp.float32) + b
        h = cast(act(h))
    logits = jnp.dot(h, cast(weights[-1]).T, preferred_element_type=jnp.float32) + biases[-1]
    return jax.nn.sigmoid(logits)


# TODO(synk): batch_normalization=True branch (NNBlockWithNormalization) and training-mode
#             dropout (p>0) are not wired in; this instantiation uses eval semantics with
#             the module defaults (batch_normalization=False, drop_out=0 -> identity).

if __name__ == "__main__":
    key = jax.random.PRNGKey(0)
    kx, kp, kx2 = jax.random.split(key, 3)

    in_features = 16
    num_neurons = (32, 32, 32)   # num_layers = 3
    activation = "relu"

    params = init_params(kp, in_features, num_neurons)

    # 1) tiny batch forced through the Pallas kernel (single grid step)
    x_small = jax.random.normal(kx, (16, in_features), dtype=jnp.float32)
    y_small = tunable_ffnn_forward(x_small, params, activation=activation,
                                   min_pallas_batch=0)
    y_small = jax.block_until_ready(y_small)
    ref_small = reference_forward(x_small, params, activation=activation)
    assert y_small.shape == (16, 1)
    assert jnp.allclose(y_small, ref_small, atol=2e-3, rtol=2e-3), "small-batch mismatch"

    # 2) ragged mid-size batch through the Pallas kernel (2 parallel grid steps, padding path)
    x_mid = jax.random.normal(kx2, (300, in_features), dtype=jnp.float32)
    y_mid = tunable_ffnn_forward(x_mid, params, activation=activation)
    y_mid = jax.block_until_ready(y_mid)
    ref_mid = reference_forward(x_mid, params, activation=activation)
    assert y_mid.shape == (300, 1)
    assert jnp.allclose(y_mid, ref_mid, atol=2e-3, rtol=2e-3), "mid-batch mismatch"

    print("KERNEL_OK")
</pallas_src>

<mosaic_0001>
module attributes {stable_mosaic.version = 11 : i64} {
  func.func @kernel(%arg0: i32, %arg1: memref<128x16xf32, #tpu.memory_space<vmem>>, %arg2: memref<4x32x32xbf16, #tpu.memory_space<vmem>>, %arg3: memref<4x32x1xf32, #tpu.memory_space<vmem>>, %arg4: memref<1x128xf32, #tpu.memory_space<vmem>>) attributes {dimension_semantics = [#tpu.dimension_semantics<parallel>], iteration_bounds = array<i64: 1>, scalar_prefetch = 0 : i64, scratch_operands = 0 : i64, tpu.core_type = #tpu.core_type<tc>, window_params = [{transform_indices = @transform_0, window_bounds = array<i64: 128, 16>}, {pipeline_mode = #tpu.pipeline_mode<synchronous>, transform_indices = @transform_1, window_bounds = array<i64: 4, 32, 32>}, {pipeline_mode = #tpu.pipeline_mode<synchronous>, transform_indices = @transform_2, window_bounds = array<i64: 4, 32, 1>}, {transform_indices = @transform_3, window_bounds = array<i64: 1, 128>}]} {
    %c0 = arith.constant 0 : index
    %c0_0 = arith.constant 0 : index
    %0 = vector.load %arg1[%c0, %c0_0] : memref<128x16xf32, #tpu.memory_space<vmem>>, vector<128x16xf32>
    %1 = arith.truncf %0 : vector<128x16xf32> to vector<128x16xbf16>
    %c0_1 = arith.constant 0 : index
    %c0_2 = arith.constant 0 : index
    %c0_3 = arith.constant 0 : index
    %2 = vector.load %arg2[%c0_1, %c0_2, %c0_3] : memref<4x32x32xbf16, #tpu.memory_space<vmem>>, vector<1x32x16xbf16>
    %3 = vector.shape_cast %2 : vector<1x32x16xbf16> to vector<32x16xbf16>
    %cst = arith.constant dense<0.000000e+00> : vector<32x128xf32>
    %4 = tpu.matmul %3, %1, %cst {dimension_numbers = #tpu.dot_dimension_numbers<[1], [1], [0], [0], [0, 0, 1, 0], [], []>} : vector<32x16xbf16>, vector<128x16xbf16>, vector<32x128xf32> -> vector<32x128xf32>
    %c0_4 = arith.constant 0 : index
    %c0_5 = arith.constant 0 : index
    %c0_6 = arith.constant 0 : index
    %5 = vector.load %arg3[%c0_4, %c0_5, %c0_6] : memref<4x32x1xf32, #tpu.memory_space<vmem>>, vector<1x32x1xf32>
    %6 = vector.shape_cast %5 : vector<1x32x1xf32> to vector<32x1xf32>
    %7 = vector.broadcast %6 : vector<32x1xf32> to vector<32x128xf32>
    %8 = arith.addf %4, %7 : vector<32x128xf32>
    %cst_7 = arith.constant 0.000000e+00 : f32
    %9 = vector.broadcast %cst_7 : f32 to vector<32x128xf32>
    %10 = arith.maximumf %8, %9 : vector<32x128xf32>
    %11 = arith.truncf %10 : vector<32x128xf32> to vector<32x128xbf16>
    %c1 = arith.constant 1 : index
    %c0_8 = arith.constant 0 : index
    %c0_9 = arith.constant 0 : index
    %12 = vector.load %arg2[%c1, %c0_8, %c0_9] : memref<4x32x32xbf16, #tpu.memory_space<vmem>>, vector<1x32x32xbf16>
    %13 = vector.shape_cast %12 : vector<1x32x32xbf16> to vector<32x32xbf16>
    %cst_10 = arith.constant dense<0.000000e+00> : vector<32x128xf32>
    %14 = tpu.matmul %13, %11, %cst_10 {dimension_numbers = #tpu.dot_dimension_numbers<[1], [0], [0], [1], [0, 0, 1, 1], [], []>} : vector<32x32xbf16>, vector<32x128xbf16>, vector<32x128xf32> -> vector<32x128xf32>
    %c1_11 = arith.constant 1 : index
    %c0_12 = arith.constant 0 : index
    %c0_13 = arith.constant 0 : index
    %15 = vector.load %arg3[%c1_11, %c0_12, %c0_13] : memref<4x32x1xf32, #tpu.memory_space<vmem>>, vector<1x32x1xf32>
    %16 = vector.shape_cast %15 : vector<1x32x1xf32> to vector<32x1xf32>
    %17 = vector.broadcast %16 : vector<32x1xf32> to vector<32x128xf32>
    %18 = arith.addf %14, %17 : vector<32x128xf32>
    %cst_14 = arith.constant 0.000000e+00 : f32
    %19 = vector.broadcast %cst_14 : f32 to vector<32x128xf32>
    %20 = arith.maximumf %18, %19 : vector<32x128xf32>
    %21 = arith.truncf %20 : vector<32x128xf32> to vector<32x128xbf16>
    %c2 = arith.constant 2 : index
    %c0_15 = arith.constant 0 : index
    %c0_16 = arith.constant 0 : index
    %22 = vector.load %arg2[%c2, %c0_15, %c0_16] : memref<4x32x32xbf16, #tpu.memory_space<vmem>>, vector<1x32x32xbf16>
    %23 = vector.shape_cast %22 : vector<1x32x32xbf16> to vector<32x32xbf16>
    %cst_17 = arith.constant dense<0.000000e+00> : vector<32x128xf32>
    %24 = tpu.matmul %23, %21, %cst_17 {dimension_numbers = #tpu.dot_dimension_numbers<[1], [0], [0], [1], [0, 0, 1, 1], [], []>} : vector<32x32xbf16>, vector<32x128xbf16>, vector<32x128xf32> -> vector<32x128xf32>
    %c2_18 = arith.constant 2 : index
    %c0_19 = arith.constant 0 : index
    %c0_20 = arith.constant 0 : index
    %25 = vector.load %arg3[%c2_18, %c0_19, %c0_20] : memref<4x32x1xf32, #tpu.memory_space<vmem>>, vector<1x32x1xf32>
    %26 = vector.shape_cast %25 : vector<1x32x1xf32> to vector<32x1xf32>
    %27 = vector.broadcast %26 : vector<32x1xf32> to vector<32x128xf32>
    %28 = arith.addf %24, %27 : vector<32x128xf32>
    %cst_21 = arith.constant 0.000000e+00 : f32
    %29 = vector.broadcast %cst_21 : f32 to vector<32x128xf32>
    %30 = arith.maximumf %28, %29 : vector<32x128xf32>
    %31 = arith.truncf %30 : vector<32x128xf32> to vector<32x128xbf16>
    %c3 = arith.constant 3 : index
    %c0_22 = arith.constant 0 : index
    %c0_23 = arith.constant 0 : index
    %32 = vector.load %arg2[%c3, %c0_22, %c0_23] : memref<4x32x32xbf16, #tpu.memory_space<vmem>>, vector<1x1x32xbf16>
    %33 = vector.shape_cast %32 : vector<1x1x32xbf16> to vector<1x32xbf16>
    %cst_24 = arith.constant dense<0.000000e+00> : vector<1x128xf32>
    %34 = tpu.matmul %33, %31, %cst_24 {dimension_numbers = #tpu.dot_dimension_numbers<[1], [0], [0], [1], [0, 0, 1, 1], [], []>} : vector<1x32xbf16>, vector<32x128xbf16>, vector<1x128xf32> -> vector<1x128xf32>
    %c3_25 = arith.constant 3 : index
    %c0_26 = arith.constant 0 : index
    %c0_27 = arith.constant 0 : index
    %35 = vector.load %arg3[%c3_25, %c0_26, %c0_27] : memref<4x32x1xf32, #tpu.memory_space<vmem>>, vector<1x1x1xf32>
    %36 = vector.shape_cast %35 : vector<1x1x1xf32> to vector<1x1xf32>
    %37 = vector.broadcast %36 : vector<1x1xf32> to vector<1x128xf32>
    %38 = arith.addf %34, %37 : vector<1x128xf32>
    %39 = arith.negf %38 : vector<1x128xf32>
    %40 = math.exp %39 : vector<1x128xf32>
    %cst_28 = arith.constant 1.000000e+00 : f32
    %41 = vector.broadcast %cst_28 : f32 to vector<1x128xf32>
    %42 = arith.addf %41, %40 : vector<1x128xf32>
    %43 = arith.divf %41, %42 : vector<1x128xf32>
    %c0_29 = arith.constant 0 : index
    %c0_30 = arith.constant 0 : index
    %44 = vector.load %arg4[%c0_29, %c0_30] : memref<1x128xf32, #tpu.memory_space<vmem>>, vector<1x128xf32>
    tpu.vector_store %arg4[%c0_29, %c0_30], %43 {strides = array<i32>} : memref<1x128xf32, #tpu.memory_space<vmem>>, vector<1x128xf32>,
    return
  }
  func.func @transform_0(%arg0: i32) -> (i32, i32) {
    %c0_i32 = arith.constant 0 : i32
    %c0_i32_0 = arith.constant 0 : i32
    return %arg0, %c0_i32 : i32, i32
  }
  func.func @transform_1(%arg0: i32) -> (i32, i32, i32) {
    %c0_i32 = arith.constant 0 : i32
    %c0_i32_0 = arith.constant 0 : i32
    %c0_i32_1 = arith.constant 0 : i32
    %c0_i32_2 = arith.constant 0 : i32
    return %c0_i32, %c0_i32_0, %c0_i32_1 : i32, i32, i32
  }
  func.func @transform_2(%arg0: i32) -> (i32, i32, i32) {
    %c0_i32 = arith.constant 0 : i32
    %c0_i32_0 = arith.constant 0 : i32
    %c0_i32_1 = arith.constant 0 : i32
    %c0_i32_2 = arith.constant 0 : i32
    return %c0_i32, %c0_i32_0, %c0_i32_1 : i32, i32, i32
  }
  func.func @transform_3(%arg0: i32) -> (i32, i32) {
    %c0_i32 = arith.constant 0 : i32
    %c0_i32_0 = arith.constant 0 : i32
    return %c0_i32, %arg0 : i32, i32
  }
}

</mosaic_0001>

<bundles_post_ra>
// kernel: tpu_custom_call.1
= control target key start
LH: loop header
LB: loop body
LE: loop exit
PB: predicated region body
PF: predicated region fallthrough
CT: control target
= control target key end

     0   :  { %vm78_vm0 = vcmask 130048   ;;  %v585_v5 = vmov 0   ;;  %s752_s0 = inlined_call_operand.vmem [shape: f32[128,16], index: 0, kind: input, shape index: {}]   ;;  %s753_s1 = inlined_call_operand.vmem [shape: bf16[4,32,32], index: 1, kind: input, shape index: {}]   ;;  %s754_s2 = inlined_call_operand.vmem [shape: f32[4,32,1], index: 2, kind: input, shape index: {}]   ;;  %s755_s3 = inlined_call_operand.hbm [shape: f32[1,128], index: 3, kind: output, shape index: {}]  }
   0x1   :  { %v16_v0 = vld [vmem:[%s752_s0] sm:$0xff]  ;;  %v17_v1 = vld [vmem:[%s752_s0 + $0x8] sm:$0xff]  ;;  %v18_v2 = vld [vmem:[%s752_s0 + $0x10] sm:$0xff]  ;;  %549 = vset.pattern.permute.xlu0 %v585_v5  ;;  %550 = vset.pattern.permute.xlu1 %v585_v5 }
   0x2   :  { %v32_v3 = vpack.c.bf16 %v17_v1, %v16_v0  ;;  %v19_v4 = vld [vmem:[%s752_s0 + $0x18] sm:$0xff]  ;;  %v20_v8 = vld [vmem:[%s752_s0 + $0x20] sm:$0xff]  ;;  %v21_v9 = vld [vmem:[%s752_s0 + $0x28] sm:$0xff] }
   0x3   :  { %v33_v6 = vpack.c.bf16 %v19_v4, %v18_v2  ;;  %v551_v10 = vld [vmem:[%s753_s1] sm:$0xff]   ;;  %v46_v12 = vld [vmem:[%s754_s2 + $0x10] sm:$0xff]  ;;  %v34_v14 = vpack.c.bf16 %v21_v9, %v20_v8  ;;  %v45_v15 = vld [vmem:[%s754_s2 + $0x8] sm:$0xff] }
   0x4   :  { %537 = vmatprep.subr.msk.bf16.mxu0 %vm78_vm0, %v32_v3  ;;  %v86_v7 = vsel %vm78_vm0, %v32_v3, 0  ;;  %v44_v11 = vld [vmem:[%s754_s2] sm:$0xff]  ;;  %509 = vmatprep.mubr.msk.bf16.mxu0 %vm78_vm0, %v551_v10  ;;  %v47_v16 = vld [vmem:[%s754_s2 + $0x18] sm:$0xff]  ;;  %v22_v18 = vld [vmem:[%s752_s0 + $0x30] sm:$0xff] }
   0x5   :  { %494 = vmatpush3.bf16.xpose.msra.mxu0 %v86_v7  ;;  %50 = vperm.xlu0 %549, %v44_v11   ;;  %v89_v13 = vsel %vm78_vm0, %v33_v6, 0  ;;  %v448_v17 = vld [vmem:[%s754_s2 + $0x20] sm:$0xff]  ;;  %v23_v19 = vld [vmem:[%s752_s0 + $0x38] sm:$0xff]  ;;  %v449_v20 = vld [vmem:[%s754_s2 + $0x28] sm:$0xff] }
   0x6   :  { %538 = vmatprep.subr.msk.bf16.mxu0 %vm78_vm0, %v33_v6  ;;  %60 = vperm.xlu1 %550, %v46_v12  }
   0x9   :  { %55 = vperm.xlu0 %549, %v45_v15  }
   0xa   :  { %65 = vperm.xlu1 %550, %v47_v16  }
   0xd   :  { %496 = vmatpush3.bf16.xpose.msra.mxu0 %v89_v13 }
   0xe   :  { %539 = vmatprep.subr.msk.bf16.mxu0 %vm78_vm0, %v34_v14 }
   0xf   :  { %8 = vsyncpa [#allocation3], 0  ;;  %176 = vperm.xlu0 %549, %v448_v17   ;;  %v92_v21 = vsel %vm78_vm0, %v34_v14, 0  ;;  %v35_v22 = vpack.c.bf16 %v23_v19, %v22_v18  ;;  %v450_v23 = vld [vmem:[%s754_s2 + $0x30] sm:$0xff]  ;;  %181 = vperm.xlu1 %550, %v449_v20   ;;  %v451_v24 = vld [vmem:[%s754_s2 + $0x38] sm:$0xff]  ;;  %vm204_vm1 = vcmask 261120  }
  0x10   :  { %v460_v25 = vld [vmem:[%s754_s2 + $0x40] sm:$0xff]  ;;  %v25_v27 = vld [vmem:[%s752_s0 + $0x48] sm:$0xff]  ;;  %v462_v31 = vld [vmem:[%s754_s2 + $0x50] sm:$0xff]  ;;  %vm587_vm2 = vmmov 0   ;;  %s588_s28 = smov [#allocation2]  }
  0x11   :  { %v24_v26 = vld [vmem:[%s752_s0 + $0x40] sm:$0xff]  ;;  %v461_v28 = vld [vmem:[%s754_s2 + $0x48] sm:$0xff]  ;;  %v95_v29 = vsel %vm78_vm0, %v35_v22, 0  ;;  %v463_v32 = vld [vmem:[%s754_s2 + $0x58] sm:$0xff]  ;;  %s432_s29 = sshll.u32 %s588_s28, 4  ;;  %s433_s29 = int_to_ptr.vmem [resolvable:$true] %s432_s29 }
  0x12   :  { %v36_v30 = vpack.c.bf16 %v25_v27, %v24_v26  ;;  %v469_v33 = vld [vmem:[%s754_s2 + $0x60] sm:$0x1]  ;;  %v26_v34 = vld [vmem:[%s752_s0 + $0x50] sm:$0xff]  ;;  %v27_v35 = vld [vmem:[%s752_s0 + $0x58] sm:$0xff]  ;;  %s561_s30 = scalar_lea.vmem %s433_s29, 16  ;;  %p566_p1 = scmp.lt.s32.totalorder %s433_s29, %s433_s29 }
  0x13   :  { %186 = vperm.xlu0 %549, %v450_v23   ;;  %191 = vperm.xlu1 %550, %v451_v24   ;;  %v37_v37 = vpack.c.bf16 %v27_v35, %v26_v34  ;;  %v28_v38 = vld [vmem:[%s752_s0 + $0x60] sm:$0xff]  ;;  %v29_v39 = vld [vmem:[%s752_s0 + $0x68] sm:$0xff]  ;;  %v30_v42 = vld [vmem:[%s752_s0 + $0x70] sm:$0xff]  ;;  %v586_v24 = vmov 0.0   ;;  %p562_p0 = scmp.ne.s32.totalorder %s433_s29, %s561_s30 }
  0x14   :  { %v98_v36 = vsel %vm78_vm0, %v36_v30, 0  ;;  %v38_v41 = vpack.c.bf16 %v29_v39, %v28_v38  ;;  %v31_v43 = vld [vmem:[%s752_s0 + $0x78] sm:$0xff]  ;;  %v552_v47 = vld [vmem:[%s753_s1 + $0x8] sm:$0xff]   ;;  %v553_v48 = vld [vmem:[%s753_s1 + $0x10] sm:$0xff]  }
  0x15   :  { %498 = vmatpush3.bf16.xpose.msra.mxu0 %v92_v21  ;;  %v101_v40 = vsel %vm78_vm0, %v37_v37, 0  ;;  %v39_v45 = vpack.c.bf16 %v31_v43, %v30_v42  ;;  %517 = vmatprep.mubr.msk.bf16.mxu1 %vm204_vm1, %v553_v48  ;;  %v554_v3 = vld [vmem:[%s753_s1 + $0x18] sm:$0xff]   ;;  %v555_v4 = vld [vmem:[%s753_s1 + $0x20] sm:$0xff]   ;;  %v556_v23 = vld [vmem:[%s753_s1 + $0x28] sm:$0xff]  }
  0x16   :  { %540 = vmatprep.subr.msk.bf16.mxu0 %vm78_vm0, %v35_v22  ;;  %v104_v44 = vsel %vm78_vm0, %v38_v41, 0  ;;  %v468_v43 = vld [vmem:[%s753_s1 + $0x30] sm:$0x1]  ;;  %s565_s1 = scalar_lea.vmem %s433_s29, 32 }
  0x17   :  { %278 = vperm.xlu0 %549, %v460_v25   ;;  %283 = vperm.xlu1 %550, %v461_v28   ;;  %v107_v46 = vsel %vm78_vm0, %v39_v45, 0  ;;  %p567_p2 = scmp.lt.s32.totalorder %s565_s1, %s561_s30 }
  0x19   :  { %p568_p3 = por %p567_p2, %p566_p1 }
  0x1b   :  { %288 = vperm.xlu0 %549, %v462_v31   ;;  %293 = vperm.xlu1 %550, %v463_v32   ;;  %p569_p4 = pnand %p568_p3, %p562_p0 }
  0x1d   :  { %500 = vmatpush3.bf16.xpose.msra.mxu0 %v95_v29 }
  0x1e   :  { %541 = vmatprep.subr.msk.bf16.mxu0 %vm78_vm0, %v36_v30 }
  0x1f   :  { %373 = vperm.xlu0 %549, %v469_v33  }
  0x25   :  { %502 = vmatpush3.bf16.xpose.msra.mxu0 %v98_v36 }
  0x26   :  { %542 = vmatprep.subr.msk.bf16.mxu0 %vm78_vm0, %v37_v37 }
  0x2d   :  { %504 = vmatpush3.bf16.xpose.msra.mxu0 %v101_v40 }
  0x2e   :  { %543 = vmatprep.subr.msk.bf16.mxu0 %vm78_vm0, %v38_v41 }
  0x35   :  { %506 = vmatpush3.bf16.xpose.msra.mxu0 %v104_v44 }
  0x36   :  { %544 = vmatprep.subr.msk.bf16.mxu0 %vm78_vm0, %v39_v45 }
  0x3d   :  { %508 = vmatpush3.bf16.xpose.msra.mxu0 %v107_v46 }
  0x44   :  { %510 = vmatmul.mubr.msk.bf16.vlgmr.msra.gmra.mrb[0].mxu0 %vm78_vm0, %v552_v47 }
  0x84   :  { %v51_v50 = vpop.permute.xlu0 %50 }
  0x85   :  { %v61_v49 = vpop.permute.xlu1 %60 }
  0x88   :  { %v56_v57 = vpop.permute.xlu0 %55 }
  0x89   :  { %v66_v54 = vpop.permute.xlu1 %65 }
  0x8e   :  { %v177_v5 = vpop.permute.xlu0 %176  ;;  %v182_v6 = vpop.permute.xlu1 %181 }
  0x92   :  { %v187_v7 = vpop.permute.xlu0 %186  ;;  %v192_v11 = vpop.permute.xlu1 %191 }
  0x96   :  { %v279_v25 = vpop.permute.xlu0 %278  ;;  %v284_v26 = vpop.permute.xlu1 %283 }
  0x9a   :  { %v289_v27 = vpop.permute.xlu0 %288  ;;  %v294_v31 = vpop.permute.xlu1 %293 }
  0x9e   :  { %v374_v44 = vpop.permute.xlu0 %373 }
 0x117   :  { %v511_v51 = vpop.f32.mrb[0].mxu0 }
 0x118   :  { %v152_v52 = vadd.f32 %v511_v51, %v61_v49  ;;  %v143_v53 = vpop.f32.mrb[1].mxu0 }
 0x119   :  { %v144_v55 = vadd.f32 %v143_v53, %v51_v50  ;;  %v512_v56 = vpop.f32.mrb[2].mxu0 }
 0x11a   :  { %v155_v58 = vadd.f32 %v512_v56, %v66_v54  ;;  %v146_v59 = vpop.f32.mrb[3].mxu0  ;;  %v160_v61 = vmax.f32 %v152_v52, 0.0 }
 0x11b   :  { %v147_v60 = vadd.f32 %v146_v59, %v56_v57  ;;  %v158_v63 = vmax.f32 %v144_v55, 0.0 }
 0x11c   :  { %v161_v62 = vmax.f32 %v155_v58, 0.0 }
 0x11d   :  { %v159_v0 = vmax.f32 %v147_v60, 0.0 }
 0x11e   :  { %v163_v1 = vpack.c.bf16 %v161_v62, %v160_v61 }
 0x11f   :  { %v162_v2 = vpack.c.bf16 %v159_v0, %v158_v63 }
 0x121   :  { %513 = vmatprep.subr.bf16.mxu1 %v162_v2 }
 0x122   :  { %514 = vmatpush3.bf16.msra.mxu1 %v162_v2 }
 0x123   :  { %515 = vmatprep.subr.bf16.mxu1 %v163_v1 }
 0x126   :  { %516 = vmatpush3.bf16.msra.mxu1 %v163_v1 }
 0x129   :  { %518 = vmatmul.mubr.msk.bf16.vlgmr.msra.gmra.mrb[0].mxu1 %vm204_vm1, %v554_v3 }
 0x12a   :  { %525 = vmatprep.mubr.msk.bf16.mxu1 %vm204_vm1, %v555_v4 }
 0x1fc   :  { %v519_v8 = vpop.f32.mrb[0].mxu1 }
 0x1fd   :  { %v254_v9 = vadd.f32 %v519_v8, %v187_v7  ;;  %v245_v10 = vpop.f32.mrb[1].mxu1 }
 0x1fe   :  { %v246_v12 = vadd.f32 %v245_v10, %v177_v5  ;;  %v520_v13 = vpop.f32.mrb[2].mxu1 }
 0x1ff   :  { %v257_v14 = vadd.f32 %v520_v13, %v192_v11  ;;  %v248_v15 = vpop.f32.mrb[3].mxu1  ;;  %v262_v17 = vmax.f32 %v254_v9, 0.0 }
 0x200   :  { %v249_v16 = vadd.f32 %v248_v15, %v182_v6  ;;  %v260_v19 = vmax.f32 %v246_v12, 0.0 }
 0x201   :  { %v263_v18 = vmax.f32 %v257_v14, 0.0 }
 0x202   :  { %v261_v20 = vmax.f32 %v249_v16, 0.0 }
 0x203   :  { %v265_v21 = vpack.c.bf16 %v263_v18, %v262_v17 }
 0x204   :  { %v264_v22 = vpack.c.bf16 %v261_v20, %v260_v19 }
 0x206   :  { %521 = vmatprep.subr.bf16.mxu1 %v264_v22 }
 0x207   :  { %522 = vmatpush3.bf16.msra.mxu1 %v264_v22 }
 0x208   :  { %523 = vmatprep.subr.bf16.mxu1 %v265_v21 }
 0x20b   :  { %524 = vmatpush3.bf16.msra.mxu1 %v265_v21 }
 0x20c   :  { %529 = vmatprep.subr.bf16.mxu1 %v586_v24 }
 0x20e   :  { %526 = vmatmul.mubr.msk.bf16.vlgmr.msra.gmra.mrb[4].mxu1 %vm204_vm1, %v556_v23 }
 0x20f   :  { %533 = vmatprep.mubr.msk.bf16.mxu1 %vm587_vm2, %v586_v24 }
 0x2e1   :  { %v527_v28 = vpop.f32.mrb[4].mxu1 }
 0x2e2   :  { %v355_v29 = vadd.f32 %v527_v28, %v289_v27  ;;  %v346_v30 = vpop.f32.mrb[5].mxu1 }
 0x2e3   :  { %v347_v32 = vadd.f32 %v346_v30, %v279_v25  ;;  %v528_v33 = vpop.f32.mrb[6].mxu1 }
 0x2e4   :  { %v358_v34 = vadd.f32 %v528_v33, %v294_v31  ;;  %v349_v35 = vpop.f32.mrb[7].mxu1  ;;  %v363_v37 = vmax.f32 %v355_v29, 0.0 }
 0x2e5   :  { %v350_v36 = vadd.f32 %v349_v35, %v284_v26  ;;  %v361_v39 = vmax.f32 %v347_v32, 0.0 }
 0x2e6   :  { %v364_v38 = vmax.f32 %v358_v34, 0.0 }
 0x2e7   :  { %v362_v40 = vmax.f32 %v350_v36, 0.0 }
 0x2e8   :  { %v366_v41 = vpack.c.bf16 %v364_v38, %v363_v37 }
 0x2e9   :  { %v365_v42 = vpack.c.bf16 %v362_v40, %v361_v39 }
 0x2eb   :  { %530 = vmatpush3.bf16.msra.mxu1 %v365_v42 }
 0x2ec   :  { %531 = vmatprep.subr.bf16.mxu1 %v586_v24 }
 0x2ef   :  { %532 = vmatpush3.bf16.msra.mxu1 %v366_v41 }
 0x2f2   :  { %534 = vmatmul.mubr.msk.bf16.vlgmr.msra.gmra.mrb[8].mxu1 %vm204_vm1, %v468_v43 }
 0x3c5   :  { %v413_v45 = vpop.f32.mrb[8].mxu1 }
 0x3c6   :  { %v414_v46 = vadd.f32 %v413_v45, %v374_v44  ;;  %v535_v47 = vpop.f32.mrb[9].mxu1 }
 0x3c7   :  { %v416_v48 = vpop.f32.mrb[10].mxu1 }
 0x3c8   :  { %v471_v49 = vmul.f32 -1.442695, %v414_v46  ;;  %v536_v50 = vpop.f32.mrb[11].mxu1 }
 0x3ca   :  { %557 = vpow2.f32 %v471_v49 }
 0x3d4   :  { %v558_v51 = vpop.eup %557 }
 0x3d5   :  { %v422_v52 = vadd.f32 1.0, %v558_v51 }
 0x3d7   :  { %559 = vrcp.f32 %v422_v52 }
 0x3e1   :  { %v560_v53 = vpop.eup %559 }
 0x3e2   :  { %425 = vst [vmem:[#allocation2] sm:$0x1] %v560_v53 }
 0x3e3   :  { %572 = shalt.err (!%p569_p4)
}
 0x3e4   :  { %s573_s6 = scalar_lea.hbm %s755_s3, 16 }
 0x3e5   :  { %p574_p5 = scmp.ne.s32.totalorder %s755_s3, %s573_s6  ;;  %p577_p6 = scmp.lt.u32.totalorder %s573_s6, %s755_s3 }
 0x3e7   :  { %p579_p7 = pnand %p577_p6, %p574_p5 }
 0x3e9   :  { %582 = shalt.err (!%p579_p7)
}
 0x3ea   :  { %435 = dma.vmem_to_hbm [thread:$0]  %s433_s29, 16, %s755_s3, [#allocation3]  }
 0x3eb   :  { %583 = dma.done.wait [#allocation3], 16  }
 0x3ec   :  { %584 = vsyncadd [#allocation3], 4294967280 }
 0x3ed   :  { %439 = vsyncpa [#allocation3], 1 }

</bundles_post_ra>
